<compile_context>
chip_gen: v5e
topology: v5e:2x2
jax: 0.10.0
libtpu: 0.0.40
codegen_flags: <defaults>
</compile_context>

<pallas_src>
import functools

import jax
import jax.numpy as jnp
from jax.experimental import pallas as pl
from jax.experimental.pallas import tpu as pltpu


def _round_up(x, m):
    return ((x + m - 1) // m) * m


def edge_mlp_kernel(x_ref, w1_ref, b1_ref, w2_ref, b2_ref, o_ref):
    """Fused 2-layer MLP for one tile of edges.

    x_ref  : [tm, KP]  bf16  packed [dst_feat|dst_hid|src_feat|src_hid|dist|0-pad]
    w1_ref : [KP, 128] bf16  (zero rows under the 0-pad columns)
    b1_ref : [1, 128]  f32
    w2_ref : [128, edgemb] bf16
    b2_ref : [1, edgemb]   f32
    o_ref  : [tm, edgemb]  f32
    """
    # Layer 1: single MXU matmul over the packed concat block, f32 accumulation.
    h = jnp.dot(x_ref[...], w1_ref[...], preferred_element_type=jnp.float32)
    h = jnp.maximum(h + b1_ref[...], 0.0)                 # bias + ReLU in f32

    # Layer 2: bf16 MXU matmul (single pass), f32 accumulation, bias + ReLU.
    o = jnp.dot(h.astype(jnp.bfloat16), w2_ref[...],
                preferred_element_type=jnp.float32)
    o = jnp.maximum(o + b2_ref[...], 0.0)
    o_ref[...] = o.astype(o_ref.dtype)


@functools.partial(jax.jit, static_argnames=("tile_m",))
def edge_network_forward(dst_feat, dst_hid, src_feat, src_hid, distance,
                         w1, b1, w2, b2, *, tile_m=4096):
    """Pallas implementation of EdgeNetwork.forward.

    dst_feat, src_feat : [E, nodefeat]
    dst_hid,  src_hid  : [E, nodemb]
    distance           : [E]
    w1 : [2*nodemb + 2*nodefeat + 1, 128], b1 : [128]
    w2 : [128, edgemb],                    b2 : [edgemb]
    """
    e, nf = dst_feat.shape
    nm = dst_hid.shape[1]
    hidden = w1.shape[1]
    edgemb = w2.shape[1]

    k = 2 * nm + 2 * nf + 1          # virtual concat width (= 69 for defaults)
    kp = _round_up(k, 8)             # small column pad; block = full array dim

    cdt = jnp.bfloat16
    # ONE fused pack+cast pass (torch.cat ordering preserved); replaces the old
    # standalone bf16 pre-cast AND the 5 separate narrow input streams.
    parts = [dst_feat.astype(cdt), dst_hid.astype(cdt),
             src_feat.astype(cdt), src_hid.astype(cdt),
             distance.reshape(e, 1).astype(cdt)]
    if kp > k:
        parts.append(jnp.zeros((e, kp - k), cdt))
    x = jnp.concatenate(parts, axis=1)                      # [E, kp]

    w1p = jnp.pad(w1.astype(cdt), ((0, kp - k), (0, 0)))    # zero rows for pad cols
    w2b = w2.astype(cdt)
    b1_2d = b1.reshape(1, hidden).astype(jnp.float32)
    b2_2d = b2.reshape(1, edgemb).astype(jnp.float32)

    # Edge-axis tile: up to tile_m rows (multiple of 16 for bf16 sublane
    # packing), capped so the grid keeps >= 4 blocks when E allows it
    # (>= 2 blocks per TensorCore on v7x).  ~10 MiB VMEM at tm=4096 including
    # double buffers, well under the 32 MiB default scoped limit on all gens.
    tm = max(16, min(tile_m, _round_up(pl.cdiv(e, 4), 16)))
    grid = (pl.cdiv(e, tm),)

    # Constant-index blocks (weights/biases) are copied to VMEM once: Pallas
    # skips the DMA when a block index is unchanged between grid steps.
    out = pl.pallas_call(
        edge_mlp_kernel,
        out_shape=jax.ShapeDtypeStruct((e, edgemb), jnp.float32),
        grid=grid,
        in_specs=[
            pl.BlockSpec((tm, kp), lambda i: (i, 0)),          # packed edge tile
            pl.BlockSpec((kp, hidden), lambda i: (0, 0)),      # W1 (padded rows)
            pl.BlockSpec((1, hidden), lambda i: (0, 0)),       # b1
            pl.BlockSpec((hidden, edgemb), lambda i: (0, 0)),  # W2
            pl.BlockSpec((1, edgemb), lambda i: (0, 0)),       # b2
        ],
        out_specs=pl.BlockSpec((tm, edgemb), lambda i: (i, 0)),
        compiler_params=pltpu.CompilerParams(
            dimension_semantics=("parallel",)),
    )(x, w1p, b1_2d, w2b, b2_2d)

    return {"edge_hidden_representation": out}


if __name__ == "__main__":
    # Small, deterministic problem consistent with the module's __init__.
    nodemb, nodefeat, edgemb = 32, 2, 32
    n_edges = 200                      # not tile-aligned: exercises ragged last block
    hidden = 128
    d_in = 2 * nodemb + 2 * nodefeat + 1   # = 69

    key = jax.random.PRNGKey(0)
    keys = jax.random.split(key, 9)

    # Per-edge inputs (what the DGL-style `x.src/x.dst/x.data` would provide).
    dst_feat = jax.random.normal(keys[0], (n_edges, nodefeat), jnp.float32)
    dst_hid = jax.random.normal(keys[1], (n_edges, nodemb), jnp.float32)
    src_feat = jax.random.normal(keys[2], (n_edges, nodefeat), jnp.float32)
    src_hid = jax.random.normal(keys[3], (n_edges, nodemb), jnp.float32)
    distance = jax.random.normal(keys[4], (n_edges,), jnp.float32)

    # Deterministic parameters (Linear(d_in,128), Linear(128,edgemb)).
    w1 = jax.random.normal(keys[5], (d_in, hidden), jnp.float32) * 0.05
    b1 = jax.random.normal(keys[6], (hidden,), jnp.float32) * 0.05
    w2 = jax.random.normal(keys[7], (hidden, edgemb), jnp.float32) * 0.05
    b2 = jax.random.normal(keys[8], (edgemb,), jnp.float32) * 0.05

    out = edge_network_forward(dst_feat, dst_hid, src_feat, src_hid, distance,
                               w1, b1, w2, b2)
    res = jax.block_until_ready(out["edge_hidden_representation"])

    # Pure-JAX reference mirroring the kernel precision: bf16-rounded inputs /
    # weights, f32 accumulation, h re-rounded to bf16 before layer 2.
    bf = lambda a: a.astype(jnp.bfloat16).astype(jnp.float32)
    x_ref = jnp.concatenate(
        [bf(dst_feat), bf(dst_hid), bf(src_feat), bf(src_hid),
         bf(distance)[:, None]], axis=1)
    h_ref = jnp.maximum(x_ref @ bf(w1) + b1, 0.0)
    ref = jnp.maximum(bf(h_ref) @ bf(w2) + b2, 0.0)

    assert res.shape == (n_edges, edgemb)
    assert res.dtype == jnp.float32
    assert jnp.allclose(res, ref, atol=2e-2, rtol=2e-2), \
        float(jnp.max(jnp.abs(res - ref)))

    print("KERNEL_OK")
</pallas_src>

<mosaic_0001>
module attributes {stable_mosaic.version = 11 : i64} {
  func.func @edge_mlp_kernel(%arg0: i32, %arg1: memref<64x72xbf16, #tpu.memory_space<vmem>>, %arg2: memref<72x128xbf16, #tpu.memory_space<vmem>>, %arg3: memref<1x128xf32, #tpu.memory_space<vmem>>, %arg4: memref<128x32xbf16, #tpu.memory_space<vmem>>, %arg5: memref<1x32xf32, #tpu.memory_space<vmem>>, %arg6: memref<64x32xf32, #tpu.memory_space<vmem>>) attributes {dimension_semantics = [#tpu.dimension_semantics<parallel>], iteration_bounds = array<i64: 4>, scalar_prefetch = 0 : i64, scratch_operands = 0 : i64, tpu.core_type = #tpu.core_type<tc>, window_params = [{transform_indices = @transform_0, window_bounds = array<i64: 64, 72>}, {pipeline_mode = #tpu.pipeline_mode<synchronous>, transform_indices = @transform_1, window_bounds = array<i64: 72, 128>}, {pipeline_mode = #tpu.pipeline_mode<synchronous>, transform_indices = @transform_2, window_bounds = array<i64: 1, 128>}, {pipeline_mode = #tpu.pipeline_mode<synchronous>, transform_indices = @transform_3, window_bounds = array<i64: 128, 32>}, {pipeline_mode = #tpu.pipeline_mode<synchronous>, transform_indices = @transform_4, window_bounds = array<i64: 1, 32>}, {transform_indices = @transform_5, window_bounds = array<i64: 64, 32>}]} {
    %c0 = arith.constant 0 : index
    %c0_0 = arith.constant 0 : index
    %0 = vector.load %arg1[%c0, %c0_0] : memref<64x72xbf16, #tpu.memory_space<vmem>>, vector<64x72xbf16>
    %c0_1 = arith.constant 0 : index
    %c0_2 = arith.constant 0 : index
    %1 = vector.load %arg2[%c0_1, %c0_2] : memref<72x128xbf16, #tpu.memory_space<vmem>>, vector<72x128xbf16>
    %cst = arith.constant dense<0.000000e+00> : vector<64x128xf32>
    %2 = tpu.matmul %0, %1, %cst {dimension_numbers = #tpu.dot_dimension_numbers<[1], [0], [0], [1], [0, 0, 1, 1], [], []>} : vector<64x72xbf16>, vector<72x128xbf16>, vector<64x128xf32> -> vector<64x128xf32>
    %c0_3 = arith.constant 0 : index
    %c0_4 = arith.constant 0 : index
    %3 = vector.load %arg3[%c0_3, %c0_4] : memref<1x128xf32, #tpu.memory_space<vmem>>, vector<1x128xf32>
    %4 = vector.broadcast %3 : vector<1x128xf32> to vector<64x128xf32>
    %5 = arith.addf %2, %4 : vector<64x128xf32>
    %cst_5 = arith.constant 0.000000e+00 : f32
    %6 = vector.broadcast %cst_5 : f32 to vector<64x128xf32>
    %7 = arith.maximumf %5, %6 : vector<64x128xf32>
    %8 = arith.truncf %7 : vector<64x128xf32> to vector<64x128xbf16>
    %c0_6 = arith.constant 0 : index
    %c0_7 = arith.constant 0 : index
    %9 = vector.load %arg4[%c0_6, %c0_7] : memref<128x32xbf16, #tpu.memory_space<vmem>>, vector<128x32xbf16>
    %cst_8 = arith.constant dense<0.000000e+00> : vector<64x32xf32>
    %10 = tpu.matmul %8, %9, %cst_8 {dimension_numbers = #tpu.dot_dimension_numbers<[1], [0], [0], [1], [0, 0, 1, 1], [], []>} : vector<64x128xbf16>, vector<128x32xbf16>, vector<64x32xf32> -> vector<64x32xf32>
    %c0_9 = arith.constant 0 : index
    %c0_10 = arith.constant 0 : index
    %11 = vector.load %arg5[%c0_9, %c0_10] : memref<1x32xf32, #tpu.memory_space<vmem>>, vector<1x32xf32>
    %12 = vector.broadcast %11 : vector<1x32xf32> to vector<64x32xf32>
    %13 = arith.addf %10, %12 : vector<64x32xf32>
    %cst_11 = arith.constant 0.000000e+00 : f32
    %14 = vector.broadcast %cst_11 : f32 to vector<64x32xf32>
    %15 = arith.maximumf %13, %14 : vector<64x32xf32>
    %c0_12 = arith.constant 0 : index
    %c0_13 = arith.constant 0 : index
    %16 = vector.load %arg6[%c0_12, %c0_13] : memref<64x32xf32, #tpu.memory_space<vmem>>, vector<64x32xf32>
    tpu.vector_store %arg6[%c0_12, %c0_13], %15 {strides = array<i32>} : memref<64x32xf32, #tpu.memory_space<vmem>>, vector<64x32xf32>,
    return
  }
  func.func @transform_0(%arg0: i32) -> (i32, i32) {
    %c0_i32 = arith.constant 0 : i32
    %c0_i32_0 = arith.constant 0 : i32
    return %arg0, %c0_i32 : i32, i32
  }
  func.func @transform_1(%arg0: i32) -> (i32, i32) {
    %c0_i32 = arith.constant 0 : i32
    %c0_i32_0 = arith.constant 0 : i32
    %c0_i32_1 = arith.constant 0 : i32
    return %c0_i32, %c0_i32_0 : i32, i32
  }
  func.func @transform_2(%arg0: i32) -> (i32, i32) {
    %c0_i32 = arith.constant 0 : i32
    %c0_i32_0 = arith.constant 0 : i32
    %c0_i32_1 = arith.constant 0 : i32
    return %c0_i32, %c0_i32_0 : i32, i32
  }
  func.func @transform_3(%arg0: i32) -> (i32, i32) {
    %c0_i32 = arith.constant 0 : i32
    %c0_i32_0 = arith.constant 0 : i32
    %c0_i32_1 = arith.constant 0 : i32
    return %c0_i32, %c0_i32_0 : i32, i32
  }
  func.func @transform_4(%arg0: i32) -> (i32, i32) {
    %c0_i32 = arith.constant 0 : i32
    %c0_i32_0 = arith.constant 0 : i32
    %c0_i32_1 = arith.constant 0 : i32
    return %c0_i32, %c0_i32_0 : i32, i32
  }
  func.func @transform_5(%arg0: i32) -> (i32, i32) {
    %c0_i32 = arith.constant 0 : i32
    %c0_i32_0 = arith.constant 0 : i32
    return %arg0, %c0_i32 : i32, i32
  }
}

</mosaic_0001>

<bundles_post_ra>
// kernel: edge_network_forward.1
= control target key start
LH: loop header
LB: loop body
LE: loop exit
PB: predicated region body
PF: predicated region fallthrough
CT: control target
= control target key end

     0   :  { %s1063_s18 = smov 0   ;;  %s1065_s19 = smov 0   ;;  %s1229_s0 = inlined_call_operand.vmem [shape: bf16[200,72], index: 0, kind: input, shape index: {}]   ;;  %s1230_s1 = inlined_call_operand.vmem [shape: bf16[72,128], index: 1, kind: input, shape index: {}]   ;;  %s1231_s2 = inlined_call_operand.vmem [shape: f32[1,128], index: 2, kind: input, shape index: {}]   ;;  %s1232_s3 = inlined_call_operand.vmem [shape: bf16[128,32], index: 3, kind: input, shape index: {}]   ;;  %s1233_s4 = inlined_call_operand.vmem [shape: f32[1,32], index: 4, kind: input, shape index: {}]   ;;  %s1234_s5 = inlined_call_operand.vmem [shape: f32[200,32], index: 5, kind: output, shape index: {}]  }
   0x1   :  { %s1067_s20 = smov 0  }
   0x2 LB: > { %s1076_s21 = sadd.s32 4294967295, %s999_s20   ;;  %s1078_s22 = sadd.s32 1, %s999_s20   ;;  %s999_s20 = sphi %s1067_s20, %s1242_s20   ;;  %s995_s19 = sphi %s1065_s19, %s1241_s19   ;;  %s991_s18 = sphi %s1063_s18, %s1240_s18  }
   0x3   : > { %s129_s23 = ssub.s32 %s999_s20, %s1078_s22  ;;  %s132_s24 = sadd.s32 1, %s995_s19 }
   0x4   : > { %p130_p0 = scmp.eq.s32.totalorder %s129_s23, 0  ;;  %p142_p1 = scmp.ne.s32.totalorder %s995_s19, %s991_s18 }
   0x5   : > { %p143_p2 = scmp.eq.s32.totalorder %s1076_s21, 3  ;;  %p734_p3 = scmp.ge.s32.totalorder %s999_s20, 1 }
   0x6   : > { %s1086_s25 = scalar_select %p130_p0, %s995_s19, %s132_s24  }
   0x7   : > { %p1088_p4 = por %p143_p2, %p142_p1  ;;  %p196_p5 = scmp.lt.s32.totalorder %s999_s20, 5 }
   0x9   : > { %p197_p6 = pnand %p734_p3, %p196_p5 }
   0xa   : > { %s1096_s29 = sshll.u32 (!%p197_p6), %s1076_s21, 3  ;;  %s224_s20 = sand.u32 (!%p197_p6), 1, %s991_s18  }
   0xb   : > { %200 = sbr.rel (%p197_p6) target bundleno = 406 (0x196), region = 40  ;;  %p232_p7 = scmp.lt.s32.totalorder (!%p197_p6), %s1096_s29, 24 }
   0xc   : > { %s735_s27 = sshll.u32 (!%p197_p6), %s224_s20, 6 }
   0xd   : > { %s1150_s28 = scalar_lea.vmem (!%p197_p6), [#allocation2], %s735_s27  }
  0x10   : > { %v263_v0 = vld [vmem:[%s1230_s1 + $0x20] sm:$0xf]  ;;  %vm328_vm0 = vcmask 1043456   ;;  %v830_v4 = vld [vmem:[%s1230_s1 + $0x18] sm:$0xff]  ;;  %v829_v5 = vld [vmem:[%s1230_s1 + $0x10] sm:$0xff]  ;;  %s233_s9 = scalar_select %p232_p7, %s1096_s29, 24 }
  0x11   : > { %v305_v1 = vunpack.c.l.b16 %v263_v0  ;;  %v828_v6 = vld [vmem:[%s1230_s1 + $0x8] sm:$0xff]  ;;  %v827_v7 = vld [vmem:[%s1230_s1] sm:$0xff]  ;;  %vm315_vm1 = vcmask 588800   ;;  %v838_v10 = vld [vmem:[%s1232_s3 + $0x38] sm:$0xff]  ;;  %vm478_vm2 = vcmask 261120   ;;  %s495_s18 = ssub.s32 (%p1088_p4), 25, %s1096_s29 }
  0x12   : > { %s737_s12 = sshll.u32 %s233_s9, 2  ;;  %441 = vmatpush.bf16.msra.mxu1 %v838_v10  ;;  %v837_v11 = vld [vmem:[%s1232_s3 + $0x30] sm:$0xff]  ;;  %847 = vmatpush.bf16.msra.mxu2 %v838_v10  ;;  %v836_v12 = vld [vmem:[%s1232_s3 + $0x28] sm:$0xff]  ;;  %v835_v13 = vld [vmem:[%s1232_s3 + $0x20] sm:$0xff]  ;;  %s839_s30 = sshll.u32 (%p1088_p4), %s1076_s21, 6 }
  0x13   : > { %v310_v2 = vpack.c.b16 %v305_v1, %v305_v1  ;;  %s235_s17 = scalar_lea.vmem %s1229_s0, %s737_s12  ;;  %v834_v16 = vld [vmem:[%s1232_s3 + $0x18] sm:$0xff]  ;;  %v833_v17 = vld [vmem:[%s1232_s3 + $0x10] sm:$0xff]  ;;  %v832_v18 = vld [vmem:[%s1232_s3 + $0x8] sm:$0xff]  ;;  %p496_p8 = scmp.lt.s32.totalorder (%p1088_p4), %s495_s18, 8 }
  0x14   : > { %v823_v8 = vld [vmem:[%s235_s17] sm:$0xff]  ;;  %v824_v9 = vld [vmem:[%s235_s17 + $0x8] sm:$0xff]  ;;  %v825_v14 = vld [vmem:[%s235_s17 + $0x10] sm:$0xff]  ;;  %s1175_s8 = scalar_lea.vmem (%p1088_p4), %s1234_s5, %s839_s30  }
  0x15   : > { %v330_v3 = vsel %vm328_vm0, %v310_v2, 0  ;;  %v826_v15 = vld [vmem:[%s235_s17 + $0x18] sm:$0xff]  ;;  %v831_v19 = vld [vmem:[%s1232_s3] sm:$0xff] }
  0x16   : > { %335 = vmatpush.bf16.msra.mxu0 %v330_v3  ;;  %842 = vmatpush.bf16.msra.mxu3 %v330_v3  ;;  %v943_v21 = vld [vmem:[%s1231_s2] ss:$0 sm:$0xff] }
  0x17   : > { %442 = vmatpush.bf16.msra.mxu1 %v837_v11  ;;  %848 = vmatpush.bf16.msra.mxu2 %v837_v11  ;;  %v944_v49 = vld [vmem:[%s1233_s4] ss:$0 sm:$0xff] }
  0x1a   : > { %336 = vmatpush.bf16.msra.mxu0 %v830_v4  ;;  %843 = vmatpush.bf16.msra.mxu3 %v830_v4 }
  0x1b   : > { %443 = vmatpush.bf16.msra.mxu1 %v836_v12  ;;  %849 = vmatpush.bf16.msra.mxu2 %v836_v12 }
  0x1e   : > { %337 = vmatpush.bf16.msra.mxu0 %v829_v5  ;;  %844 = vmatpush.bf16.msra.mxu3 %v829_v5 }
  0x1f   : > { %444 = vmatpush.bf16.msra.mxu1 %v835_v13  ;;  %850 = vmatpush.bf16.msra.mxu2 %v835_v13 }
  0x22   : > { %338 = vmatpush.bf16.msra.mxu0 %v828_v6  ;;  %845 = vmatpush.bf16.msra.mxu3 %v828_v6 }
  0x23   : > { %445 = vmatpush.bf16.msra.mxu1 %v834_v16  ;;  %851 = vmatpush.bf16.msra.mxu2 %v834_v16 }
  0x26   : > { %339 = vmatpush.bf16.msra.mxu0 %v827_v7  ;;  %846 = vmatpush.bf16.msra.mxu3 %v827_v7 }
  0x27   : > { %446 = vmatpush.bf16.msra.mxu1 %v833_v17  ;;  %852 = vmatpush.bf16.msra.mxu2 %v833_v17 }
  0x29   : > { %770 = vmatmul.msk.bf16.vlgmr.msra.gmra.mxu0 %vm315_vm1, %v823_v8  ;;  %771 = vmatmul.msk.bf16.vlgmr.msra.gmra.mxu3 %vm315_vm1, %v824_v9 }
  0x2b   : > { %447 = vmatpush.bf16.msra.mxu1 %v832_v18  ;;  %853 = vmatpush.bf16.msra.mxu2 %v832_v18 }
  0x2f   : > { %448 = vmatpush.bf16.msra.mxu1 %v831_v19  ;;  %854 = vmatpush.bf16.msra.mxu2 %v831_v19 }
  0x39   : > { %772 = vmatmul.msk.bf16.gmra.mxu3 %vm315_vm1, %v825_v14 }
  0x49   : > { %773 = vmatmul.msk.bf16.gmra.mxu3 %vm315_vm1, %v826_v15 }
  0xa6   : > { %v341_v20 = vpop.f32.mrf.mxu0 }
  0xa7   : > { %v342_v22 = vadd.f32 %v943_v21, %v341_v20 }
  0xa9   : > { %v361_v25 = vmax.f32 %v342_v22, 0.0 }
  0xac   : > { %v346_v23 = vpop.f32.mrf.mxu3 }
  0xad   : > { %v347_v32 = vadd.f32 %v943_v21, %v346_v23 }
  0xae   : > { %v343_v24 = vpop.f32.mrf.mxu0 }
  0xaf   : > { %v344_v26 = vadd.f32 %v943_v21, %v343_v24  ;;  %v363_v34 = vmax.f32 %v347_v32, 0.0 }
  0xb1   : > { %v362_v27 = vmax.f32 %v344_v26, 0.0 }
  0xb3   : > { %v369_v28 = vpack.c.bf16 %v362_v27, %v361_v25 }
  0xb4   : > { %v348_v29 = vpop.f32.mrf.mxu3 }
  0xb5   : > { %449 = vmatmul.bf16.vlgmr.msra.gmra.mxu1 %v369_v28  ;;  %v349_v30 = vadd.f32 %v943_v21, %v348_v29 }
  0xb7   : > { %v364_v33 = vmax.f32 %v349_v30, 0.0 }
  0xb9   : > { %v370_v36 = vpack.c.bf16 %v364_v33, %v363_v34 }
  0xbc   : > { %v351_v31 = vpop.f32.mrf.mxu3 }
  0xbd   : > { %v352_v35 = vadd.f32 %v943_v21, %v351_v31 }
  0xbf   : > { %v365_v39 = vmax.f32 %v352_v35, 0.0 }
  0xc4   : > { %v353_v37 = vpop.f32.mrf.mxu3 }
  0xc5   : > { %v354_v38 = vadd.f32 %v943_v21, %v353_v37  ;;  %454 = vmatmul.bf16.gmra.mxu1 %v370_v36 }
  0xc7   : > { %v366_v40 = vmax.f32 %v354_v38, 0.0 }
  0xc9   : > { %v371_v41 = vpack.c.bf16 %v366_v40, %v365_v39 }
  0xcb   : > { %459 = vmatmul.bf16.vlgmr.msra.gmra.mxu2 %v371_v41 }
  0xcc   : > { %v356_v42 = vpop.f32.mrf.mxu3 }
  0xcd   : > { %v357_v43 = vadd.f32 %v943_v21, %v356_v42 }
  0xcf   : > { %v367_v46 = vmax.f32 %v357_v43, 0.0 }
  0xd4   : > { %v358_v44 = vpop.f32.mrf.mxu3 }
  0xd5   : > { %v359_v45 = vadd.f32 %v943_v21, %v358_v44 }
  0xd7   : > { %v368_v47 = vmax.f32 %v359_v45, 0.0 }
  0xd9   : > { %v372_v48 = vpack.c.bf16 %v368_v47, %v367_v46 }
  0xdb   : > { %464 = vmatmul.bf16.gmra.mxu2 %v372_v48 }
 0x132   : > { %v450_v50 = vpop.f32.mrf.mxu1 }
 0x133   : > { %v451_v51 = vadd.f32 %v944_v49, %v450_v50 }
 0x135   : > { %v470_v52 = vmax.f32 %v451_v51, 0.0 }
 0x137   : > { %479 = vst.msk [vmem:[%s1150_s28] sm:$0xff] %vm478_vm2, %v470_v52 }
 0x13a   : > { %v452_v53 = vpop.f32.mrf.mxu1 }
 0x13b   : > { %v453_v54 = vadd.f32 %v944_v49, %v452_v53 }
 0x13d   : > { %v471_v55 = vmax.f32 %v453_v54, 0.0 }
 0x13f   : > { %480 = vst.msk [vmem:[%s1150_s28 + $0x8] sm:$0xff] %vm478_vm2, %v471_v55 }
 0x142   : > { %v455_v56 = vpop.f32.mrf.mxu1 }
 0x143   : > { %v456_v57 = vadd.f32 %v944_v49, %v455_v56 }
 0x145   : > { %v472_v58 = vmax.f32 %v456_v57, 0.0 }
 0x147   : > { %481 = vst.msk [vmem:[%s1150_s28 + $0x10] sm:$0xff] %vm478_vm2, %v472_v58 }
 0x14a   : > { %v457_v59 = vpop.f32.mrf.mxu1 }
 0x14b   : > { %v458_v60 = vadd.f32 %v944_v49, %v457_v59 }
 0x14d   : > { %v473_v61 = vmax.f32 %v458_v60, 0.0 }
 0x14e   : > { %v460_v62 = vpop.f32.mrf.mxu2 }
 0x14f   : > { %482 = vst.msk [vmem:[%s1150_s28 + $0x18] sm:$0xff] %vm478_vm2, %v473_v61  ;;  %v461_v63 = vadd.f32 %v944_v49, %v460_v62 }
 0x151   : > { %v474_v0 = vmax.f32 %v461_v63, 0.0 }
 0x153   : > { %483 = vst.msk [vmem:[%s1150_s28 + $0x20] sm:$0xff] %vm478_vm2, %v474_v0 }
 0x156   : > { %v462_v1 = vpop.f32.mrf.mxu2 }
 0x157   : > { %v463_v2 = vadd.f32 %v944_v49, %v462_v1 }
 0x159   : > { %v475_v3 = vmax.f32 %v463_v2, 0.0 }
 0x15b   : > { %484 = vst.msk [vmem:[%s1150_s28 + $0x28] sm:$0xff] %vm478_vm2, %v475_v3 }
 0x15e   : > { %v465_v4 = vpop.f32.mrf.mxu2 }
 0x15f   : > { %v466_v5 = vadd.f32 %v944_v49, %v465_v4 }
 0x161   : > { %v476_v6 = vmax.f32 %v466_v5, 0.0 }
 0x163   : > { %485 = vst.msk [vmem:[%s1150_s28 + $0x30] sm:$0xff] %vm478_vm2, %v476_v6 }
 0x166   : > { %v467_v7 = vpop.f32.mrf.mxu2 }
 0x167   : > { %v468_v8 = vadd.f32 %v944_v49, %v467_v7  ;;  %493 = sbr.rel (!%p1088_p4) target bundleno = 406 (0x196), region = 44 }
 0x169   : > { %v477_v9 = vmax.f32 %v468_v8, 0.0 }
 0x16b   : > { %486 = vst.msk [vmem:[%s1150_s28 + $0x38] sm:$0xff] %vm478_vm2, %v477_v9 }
 0x16c   : > { %s1244_s18 = smov (!%p496_p8, %s495_s18), 8 }
 0x16d   : > { %s808_s9 = sshll.u32 %s1244_s18, 3 }
 0x16e   : > { %p811_p9 = scmp.eq.s32.totalorder %s808_s9, 0 }
 0x16f   : > { %s1181_s10 = sshrl.u32 (!%p811_p9), %s1244_s18, 3 }
 0x170   : > { %504 = sbr.rel (%p811_p9) target bundleno = 406 (0x196), region = 48  ;;  %p812_p10 = scmp.le.s32.totalorder (!%p811_p9), %s1181_s10, 0 }
 0x175   : > { %687 = sbr.rel (%p812_p10) target bundleno = 389 (0x185), region = 124  ;;  %s1236_s21 = smov (!%p812_p10), %s1175_s8 }
 0x176   : > { %s1237_s26 = smov (!%p812_p10), %s1150_s28  ;;  %s1190_s29 = smov (!%p812_p10), 0  }
 0x177   : > { %s1192_s11 = smov (!%p812_p10), 0  }
 0x17a LB: >> { %v581_v10 = vld [vmem:[%s1007_s26] sm:$0xff]  ;;  %v583_v11 = vld [vmem:[%s1007_s26 + $0x8] sm:$0xff]  ;;  %v585_v12 = vld [vmem:[%s1007_s26 + $0x10] sm:$0xff]  ;;  %s597_s12 = sadd.s32 1, %s1011_s29  ;;  %s575_s11 = sadd.s32 1, %s1015_s11   ;;  %s1015_s11 = sphi %s1192_s11, %s575_s11   ;;  %s1011_s29 = sphi %s1190_s29, %s1239_s29   ;;  %s1007_s26 = sphi %s1237_s26, %s602_s26   ;;  %s1003_s21 = sphi %s1236_s21, %s1238_s21  }
 0x17b   : >> { %582 = vst [vmem:[%s1003_s21] sm:$0xff] %v581_v10  ;;  %v587_v13 = vld [vmem:[%s1007_s26 + $0x18] sm:$0xff]  ;;  %p598_p11 = scmp.ge.s32.totalorder %s597_s12, %s1181_s10  ;;  %v589_v14 = vld [vmem:[%s1007_s26 + $0x20] sm:$0xff]  ;;  %v591_v15 = vld [vmem:[%s1007_s26 + $0x28] sm:$0xff]  ;;  %p574_p12 = scmp.ge.s32.totalorder %s575_s11, %s1181_s10 }
 0x17c   : >> { %584 = vst [vmem:[%s1003_s21 + $0x8] sm:$0xff] %v583_v11  ;;  %v593_v16 = vld [vmem:[%s1007_s26 + $0x30] sm:$0xff]  ;;  %v595_v17 = vld [vmem:[%s1007_s26 + $0x38] sm:$0xff] }
 0x17d   : >> { %586 = vst [vmem:[%s1003_s21 + $0x10] sm:$0xff] %v585_v12  ;;  %s1246_s12 = smov (%p598_p11, %s597_s12), 0 }
 0x17e   : >> { %588 = vst [vmem:[%s1003_s21 + $0x18] sm:$0xff] %v587_v13  ;;  %s813_s13 = sshll.u32 %s1246_s12, 6  ;;  %s1239_s29 = smov %s1246_s12 }
 0x17f   : >> { %590 = vst [vmem:[%s1003_s21 + $0x20] sm:$0xff] %v589_v14  ;;  %s602_s26 = scalar_lea.vmem %s1150_s28, %s813_s13 [#allocation2]   ;;  %s603_s14 = scalar_lea.vmem %s1175_s8, %s813_s13  }
 0x180   : >> { %592 = vst [vmem:[%s1003_s21 + $0x28] sm:$0xff] %v591_v15  ;;  %577 = sbr.rel (!%p574_p12) target bundleno = 378 (0x17a), region = 130 }
 0x181   : >> { %594 = vst [vmem:[%s1003_s21 + $0x30] sm:$0xff] %v593_v16 }
 0x182   : >> { %596 = vst [vmem:[%s1003_s21 + $0x38] sm:$0xff] %v595_v17  ;;  %s1238_s21 = smov %s603_s14 }
 0x185 PF: > { %s1211_s15 = sand.u32 7, %s1244_s18   ;;  %s840_s16 = sshll.u32 %s1181_s10, 6 }
 0x186   : > { %s608_s17 = scalar_lea.vmem %s1150_s28, %s840_s16 [#allocation2]   ;;  %s610_s20 = scalar_lea.vmem %s1175_s8, %s840_s16  }
 0x187   : > { %p818_p13 = scmp.le.s32.totalorder %s1211_s15, 0 }
 0x188   : > { %s1017_s23 = smov (!%p818_p13), %s610_s20   ;;  %s1021_s24 = smov (!%p818_p13), %s608_s17  }
 0x189   : > { %701 = sbr.rel (%p818_p13) target bundleno = 406 (0x196), region = 135  ;;  %s1025_s27 = smov (!%p818_p13), 0  }
 0x18a   : > { %s1029_s30 = smov (!%p818_p13), 0  }
 0x18e LB: >> { %v620_v18 = vld [vmem:[%s1023_s24] sm:$0xff]  ;;  %s622_s18 = sadd.s32 1, %s1027_s27  ;;  %s614_s30 = sadd.s32 1, %s1031_s30   ;;  %s1031_s30 = sphi %s1029_s30, %s614_s30   ;;  %s1027_s27 = sphi %s1025_s27, %s1026_s27   ;;  %s1023_s24 = sphi %s1021_s24, %s627_s24   ;;  %s1019_s23 = sphi %s1017_s23, %s628_s23  }
 0x18f   : >> { %621 = vst [vmem:[%s1019_s23] sm:$0xff] %v620_v18  ;;  %p623_p0 = scmp.ge.s32.totalorder %s622_s18, %s1211_s15  ;;  %p613_p1 = scmp.ge.s32.totalorder %s614_s30, %s1211_s15 }
 0x191   : >> { %s1248_s18 = smov (%p623_p0, %s622_s18), 0  ;;  %616 = sbr.rel (!%p613_p1) target bundleno = 398 (0x18e), region = 141 }
 0x192   : >> { %s819_s28 = sshll.u32 %s1248_s18, 3  ;;  %s1026_s27 = smov %s1248_s18  }
 0x193   : >> { %s627_s24 = scalar_lea.vmem %s608_s17, %s819_s28 [#allocation2]   ;;  %s628_s23 = scalar_lea.vmem %s610_s20, %s819_s28  }
 0x196 PF: > { %p12_p2 = scmp.ge.s32.totalorder %s1078_s22, 6   ;;  %s1240_s18 = smov %s995_s19 }
 0x197   : > { %s1241_s19 = smov %s1086_s25  ;;  %s1242_s20 = smov %s1078_s22 }
 0x198   :  { %14 = sbr.rel (!%p12_p2) target bundleno = 2 (0x2), region = 152 }

</bundles_post_ra>
